<compile_context>
chip_gen: v7x
topology: tpu7x:2x2x1
jax: 0.10.0
libtpu: 0.0.40
codegen_flags: <defaults>
</compile_context>

<pallas_src>
import functools

import jax
import jax.numpy as jnp
from jax.experimental import pallas as pl
from jax.experimental.pallas import tpu as pltpu

ALPHA = 0.05
N_CLASS = 4

_LANE = 128          # lane width
_MAX_ROWS = 16       # up to 16*128 = 2048 spatial lanes per block
_MAX_BLOCK_BYTES = 4 << 20   # ~4 MiB of logits per grid step


def _round_up(a, m):
    return -(-a // m) * m


def _label_smoothing_kernel(x_ref, t_ref, out_ref, *, alpha, hw):
    """One grid step: tb images x C classes x (TS, 128) spatial lanes."""
    si = pl.program_id(1)                       # spatial-tile index (reduction axis)

    @pl.when(si == 0)
    def _init():
        out_ref[...] = jnp.zeros_like(out_ref)

    x = x_ref[...].astype(jnp.float32)          # (tb, C, TS, 128)
    t = t_ref[...]                              # (tb, 1, TS, 128) int32
    n_class = x.shape[1]
    ts = x.shape[2]
    lanes = x.shape[3]

    # log-sum-exp over the class axis (axis 1 -> pure VPU elementwise).
    m = jnp.max(x, axis=1, keepdims=True)                        # (tb,1,TS,128)
    lse = m[:, 0] + jnp.log(jnp.sum(jnp.exp(x - m), axis=1))     # (tb,TS,128)

    # sum_c x_c and x[target] (single select + sum, no one_hot/smoothed temps).
    sum_x = jnp.sum(x, axis=1)                                   # (tb,TS,128)
    cls_idx = jax.lax.broadcasted_iota(jnp.int32, x.shape, 1)
    x_t = jnp.sum(jnp.where(cls_idx == t, x, 0.0), axis=1)       # (tb,TS,128)

    # loss_px = lse - (1-a)*x[target] - (a/C)*sum_c x_c
    loss = lse - (1.0 - alpha) * x_t - (alpha / n_class) * sum_x  # (tb,TS,128)

    # Mask spatial padding (flattened column >= H*W) so the mean stays exact.
    row = jax.lax.broadcasted_iota(jnp.int32, loss.shape, 1)
    lane = jax.lax.broadcasted_iota(jnp.int32, loss.shape, 2)
    col = (si * ts + row) * lanes + lane
    loss = jnp.where(col < hw, loss, 0.0)

    out_ref[...] += jnp.sum(loss)


def label_smoothing_all(logits, target, alpha=ALPHA):
    """Pallas equivalent of LabelSmoothingall.forward(logits, target)."""
    if target.ndim != logits.ndim:
        target = target[:, None]                # (B, 1, H, W)
    B, C, H, W = logits.shape
    HW = H * W

    # --- lane-dense spatial tiling --------------------------------------
    rows = _round_up(HW, _LANE) // _LANE        # 128-lane rows per image
    if rows <= _MAX_ROWS:
        ts = rows                               # single spatial tile (== full dim)
    else:
        ts = _MAX_ROWS                          # multiple of 8 -> layout-legal
        rows = _round_up(rows, ts)
    hw_pad = rows * _LANE

    x = logits.reshape(B, C, HW)
    t = target.reshape(B, 1, HW).astype(jnp.int32)
    if hw_pad != HW:
        pad = hw_pad - HW
        x = jnp.pad(x, ((0, 0), (0, 0), (0, pad)))
        t = jnp.pad(t, ((0, 0), (0, 0), (0, pad)), constant_values=-1)
    x = x.reshape(B, C, rows, _LANE)
    t = t.reshape(B, 1, rows, _LANE)

    # --- pack several images per block to amortize per-step overhead ----
    blk_bytes_per_img = C * ts * _LANE * x.dtype.itemsize
    tb = max(1, min(B, _MAX_BLOCK_BYTES // max(blk_bytes_per_img, 1)))
    while B % tb:                               # tb must divide B
        tb -= 1

    n_bt = B // tb                              # batch blocks  (parallel)
    n_st = rows // ts                           # spatial blocks (reduction)

    kernel = functools.partial(_label_smoothing_kernel,
                               alpha=float(alpha), hw=HW)

    partials = pl.pallas_call(
        kernel,
        out_shape=jax.ShapeDtypeStruct((n_bt, 1, 1), jnp.float32),
        grid=(n_bt, n_st),
        in_specs=[
            pl.BlockSpec((tb, C, ts, _LANE), lambda bi, si: (bi, 0, si, 0)),
            pl.BlockSpec((tb, 1, ts, _LANE), lambda bi, si: (bi, 0, si, 0)),
        ],
        out_specs=pl.BlockSpec((1, 1, 1), lambda bi, si: (bi, 0, 0)),
        compiler_params=pltpu.CompilerParams(
            dimension_semantics=("parallel", "arbitrary"),
            vmem_limit_bytes=32 * 1024 * 1024,
        ),
    )(x, t)

    # Final reduction + mean over all B*H*W pixels done in plain JAX.
    return jnp.sum(partials) / (B * H * W)


def _reference(logits, target, alpha=ALPHA):
    """Pure-JAX reference matching the PyTorch module."""
    if target.ndim != logits.ndim:
        target = target[:, None]
    C = logits.shape[1]
    one_hot = (target == jnp.arange(C)[None, :, None, None]).astype(jnp.float32)
    smoothed = one_hot * (1.0 - alpha) + alpha / C
    logprobs = jax.nn.log_softmax(logits, axis=1)
    return (-(smoothed * logprobs).sum(1)).mean()


if __name__ == "__main__":
    key = jax.random.PRNGKey(0)
    k_logits, k_target = jax.random.split(key)

    B, C, H, W = 2, N_CLASS, 16, 16
    logits = jax.random.normal(k_logits, (B, C, H, W), dtype=jnp.float32)
    target = jax.random.randint(k_target, (B, H, W), 0, N_CLASS)  # (B, H, W)

    loss = label_smoothing_all(logits, target)
    loss = jax.block_until_ready(loss)

    ref = _reference(logits, target)
    assert jnp.allclose(loss, ref, rtol=1e-5, atol=1e-5), (loss, ref)

    print("KERNEL_OK")
</pallas_src>

<mosaic_0001>
module attributes {stable_mosaic.version = 11 : i64} {
  func.func @_label_smoothing_kernel(%arg0: i32, %arg1: i32, %arg2: memref<2x4x2x128xf32, #tpu.memory_space<vmem>>, %arg3: memref<2x1x2x128xi32, #tpu.memory_space<vmem>>, %arg4: memref<1x1x1xf32, #tpu.memory_space<vmem>>) attributes {dimension_semantics = [#tpu.dimension_semantics<parallel>, #tpu.dimension_semantics<arbitrary>], iteration_bounds = array<i64: 1, 1>, scalar_prefetch = 0 : i64, scratch_operands = 0 : i64, tpu.core_type = #tpu.core_type<tc>, window_params = [{transform_indices = @transform_0, window_bounds = array<i64: 2, 4, 2, 128>}, {transform_indices = @transform_1, window_bounds = array<i64: 2, 1, 2, 128>}, {transform_indices = @transform_2, window_bounds = array<i64: 1, 1, 1>}]} {
    %c0_i32 = arith.constant 0 : i32
    %0 = arith.cmpi eq, %arg1, %c0_i32 : i32
    %1 = arith.extui %0 : i1 to i32
    %c0_i32_0 = arith.constant 0 : i32
    %2 = arith.cmpi ne, %1, %c0_i32_0 : i32
    scf.if %2 {
      %cst_22 = arith.constant 0.000000e+00 : f32
      %47 = vector.broadcast %cst_22 : f32 to vector<1x1x1xf32>
      %c0_23 = arith.constant 0 : index
      %c0_24 = arith.constant 0 : index
      %c0_25 = arith.constant 0 : index
      %48 = vector.load %arg4[%c0_23, %c0_24, %c0_25] : memref<1x1x1xf32, #tpu.memory_space<vmem>>, vector<1x1x1xf32>
      tpu.vector_store %arg4[%c0_23, %c0_24, %c0_25], %47 {strides = array<i32>} : memref<1x1x1xf32, #tpu.memory_space<vmem>>, vector<1x1x1xf32>,
    } else {
    }
    %c0 = arith.constant 0 : index
    %c0_1 = arith.constant 0 : index
    %c0_2 = arith.constant 0 : index
    %c0_3 = arith.constant 0 : index
    %3 = vector.load %arg2[%c0, %c0_1, %c0_2, %c0_3] : memref<2x4x2x128xf32, #tpu.memory_space<vmem>>, vector<2x4x2x128xf32>
    %c0_4 = arith.constant 0 : index
    %c0_5 = arith.constant 0 : index
    %c0_6 = arith.constant 0 : index
    %c0_7 = arith.constant 0 : index
    %4 = vector.load %arg3[%c0_4, %c0_5, %c0_6, %c0_7] : memref<2x1x2x128xi32, #tpu.memory_space<vmem>>, vector<2x1x2x128xi32>
    %cst = arith.constant dense<0xFF800000> : vector<2x2x128xf32>
    %5 = vector.multi_reduction <maximumf>, %3, %cst [1] : vector<2x4x2x128xf32> to vector<2x2x128xf32>
    %6 = vector.shape_cast %5 : vector<2x2x128xf32> to vector<2x1x2x128xf32>
    %7 = vector.shape_cast %6 : vector<2x1x2x128xf32> to vector<2x2x128xf32>
    %8 = vector.broadcast %6 : vector<2x1x2x128xf32> to vector<2x4x2x128xf32>
    %9 = arith.subf %3, %8 : vector<2x4x2x128xf32>
    %10 = math.exp %9 : vector<2x4x2x128xf32>
    %cst_8 = arith.constant dense<0.000000e+00> : vector<2x2x128xf32>
    %11 = vector.multi_reduction <add>, %10, %cst_8 [1] : vector<2x4x2x128xf32> to vector<2x2x128xf32>
    %12 = math.log %11 : vector<2x2x128xf32>
    %13 = arith.addf %7, %12 : vector<2x2x128xf32>
    %cst_9 = arith.constant dense<0.000000e+00> : vector<2x2x128xf32>
    %14 = vector.multi_reduction <add>, %3, %cst_9 [1] : vector<2x4x2x128xf32> to vector<2x2x128xf32>
    %15 = tpu.iota {dimensions = array<i32: 1>} : vector<2x4x2x128xi32>
    %16 = vector.broadcast %4 : vector<2x1x2x128xi32> to vector<2x4x2x128xi32>
    %17 = arith.cmpi eq, %15, %16 : vector<2x4x2x128xi32>
    %cst_10 = arith.constant 0.000000e+00 : f32
    %18 = vector.broadcast %cst_10 : f32 to vector<2x4x2x128xf32>
    %19 = arith.select %17, %3, %18 : vector<2x4x2x128xi1>, vector<2x4x2x128xf32>
    %cst_11 = arith.constant dense<0.000000e+00> : vector<2x2x128xf32>
    %20 = vector.multi_reduction <add>, %19, %cst_11 [1] : vector<2x4x2x128xf32> to vector<2x2x128xf32>
    %cst_12 = arith.constant 0.949999988 : f32
    %21 = vector.broadcast %cst_12 : f32 to vector<2x2x128xf32>
    %22 = arith.mulf %21, %20 : vector<2x2x128xf32>
    %23 = arith.subf %13, %22 : vector<2x2x128xf32>
    %cst_13 = arith.constant 1.250000e-02 : f32
    %24 = vector.broadcast %cst_13 : f32 to vector<2x2x128xf32>
    %25 = arith.mulf %24, %14 : vector<2x2x128xf32>
    %26 = arith.subf %23, %25 : vector<2x2x128xf32>
    %27 = tpu.iota {dimensions = array<i32: 1>} : vector<2x2x128xi32>
    %28 = tpu.iota {dimensions = array<i32: 2>} : vector<2x2x128xi32>
    %c2_i32 = arith.constant 2 : i32
    %29 = arith.muli %arg1, %c2_i32 : i32
    %30 = vector.broadcast %29 : i32 to vector<2x2x128xi32>
    %31 = arith.addi %30, %27 : vector<2x2x128xi32>
    %c128_i32 = arith.constant 128 : i32
    %32 = vector.broadcast %c128_i32 : i32 to vector<2x2x128xi32>
    %33 = arith.muli %31, %32 : vector<2x2x128xi32>
    %34 = arith.addi %33, %28 : vector<2x2x128xi32>
    %c256_i32 = arith.constant 256 : i32
    %35 = vector.broadcast %c256_i32 : i32 to vector<2x2x128xi32>
    %36 = arith.cmpi slt, %34, %35 : vector<2x2x128xi32>
    %cst_14 = arith.constant 0.000000e+00 : f32
    %37 = vector.broadcast %cst_14 : f32 to vector<2x2x128xf32>
    %38 = arith.select %36, %26, %37 : vector<2x2x128xi1>, vector<2x2x128xf32>
    %c0_15 = arith.constant 0 : index
    %c0_16 = arith.constant 0 : index
    %c0_17 = arith.constant 0 : index
    %39 = vector.load %arg4[%c0_15, %c0_16, %c0_17] : memref<1x1x1xf32, #tpu.memory_space<vmem>>, vector<1x1x1xf32>
    %40 = vector.shape_cast %38 : vector<2x2x128xf32> to vector<1x2x2x128xf32>
    %cst_18 = arith.constant dense<0.000000e+00> : vector<1xf32>
    %41 = vector.multi_reduction <add>, %40, %cst_18 [1, 2, 3] : vector<1x2x2x128xf32> to vector<1xf32>
    %42 = vector.shape_cast %41 : vector<1xf32> to vector<1x1x1x1xf32>
    %43 = vector.extract %42[0, 0, 0, 0] : f32 from vector<1x1x1x1xf32>
    %44 = vector.broadcast %43 : f32 to vector<1x1x1xf32>
    %45 = arith.addf %39, %44 : vector<1x1x1xf32>
    %c0_19 = arith.constant 0 : index
    %c0_20 = arith.constant 0 : index
    %c0_21 = arith.constant 0 : index
    %46 = vector.load %arg4[%c0_19, %c0_20, %c0_21] : memref<1x1x1xf32, #tpu.memory_space<vmem>>, vector<1x1x1xf32>
    tpu.vector_store %arg4[%c0_19, %c0_20, %c0_21], %45 {strides = array<i32>} : memref<1x1x1xf32, #tpu.memory_space<vmem>>, vector<1x1x1xf32>,
    return
  }
  func.func @transform_0(%arg0: i32, %arg1: i32) -> (i32, i32, i32, i32) {
    %c0_i32 = arith.constant 0 : i32
    %c0_i32_0 = arith.constant 0 : i32
    %c0_i32_1 = arith.constant 0 : i32
    return %arg0, %c0_i32, %arg1, %c0_i32_0 : i32, i32, i32, i32
  }
  func.func @transform_1(%arg0: i32, %arg1: i32) -> (i32, i32, i32, i32) {
    %c0_i32 = arith.constant 0 : i32
    %c0_i32_0 = arith.constant 0 : i32
    %c0_i32_1 = arith.constant 0 : i32
    return %arg0, %c0_i32, %arg1, %c0_i32_0 : i32, i32, i32, i32
  }
  func.func @transform_2(%arg0: i32, %arg1: i32) -> (i32, i32, i32) {
    %c0_i32 = arith.constant 0 : i32
    %c0_i32_0 = arith.constant 0 : i32
    %c0_i32_1 = arith.constant 0 : i32
    return %arg0, %c0_i32, %c0_i32_0 : i32, i32, i32
  }
}

</mosaic_0001>

<bundles_post_ra>
// kernel: tpu_custom_call.1
= control target key start
LH: loop header
LB: loop body
LE: loop exit
PB: predicated region body
PF: predicated region fallthrough
CT: control target
= control target key end

     0   :  { %7 = vsyncpa [#allocation3], 0  ;;  %s468_s0 = inlined_call_operand.hbm [shape: f32[2,4,2,128], index: 0, kind: input, shape index: {}]   ;;  %s469_s1 = inlined_call_operand.hbm [shape: s32[2,1,2,128], index: 1, kind: input, shape index: {}]   ;;  %s470_s2 = inlined_call_operand.hbm [shape: f32[1,1,1], index: 2, kind: output, shape index: {}]  }
   0x1   :  { %8 = vsyncpa [#allocation6], 0 }
   0x2   :  { %9 = vsyncpa [#allocation4], 0  ;;  %s312_s9 = smov [#allocation2]   ;;  %s240_s13 = scalar_lea.hbm %s468_s0, 256 }
   0x3   :  { %s15_s10 = sshll.u32 %s312_s9, 4  ;;  %p241_p0 = scmp.ne.s32.totalorder %s468_s0, %s240_s13  ;;  %s16_s10 = int_to_ptr.vmem [resolvable:$true] %s15_s10 }
   0x4   :  { %p244_p1 = scmp.lt.u32.totalorder %s240_s13, %s468_s0 }
   0x6   :  { %p246_p2 = pnand %p244_p1, %p241_p0 }
   0x8   :  { %249 = shalt.err (!%p246_p2)
}
   0x9   :  { %s250_s18 = scalar_lea.vmem %s16_s10, 256  ;;  %p255_p4 = scmp.lt.s32.totalorder %s16_s10, %s16_s10 }
   0xa   :  { %p251_p3 = scmp.ne.s32.totalorder %s16_s10, %s250_s18  ;;  %p256_p5 = scmp.lt.s32.totalorder %s250_s18, %s250_s18 }
   0xc   :  { %p257_p6 = por %p256_p5, %p255_p4 }
   0xe   :  { %p258_p7 = pnand %p257_p6, %p251_p3 }
  0x10   :  { %261 = shalt.err (!%p258_p7)
}
  0x11   :  { %s313_s19 = smov 32   ;;  %s314_s20 = smov 2  }
  0x12   :  { %21 = dma.hbm_to_vmem [thread:$0]  %s468_s0, 256, %s16_s10, [#allocation3], %s313_s19, %s313_s19, %s314_s20  }
  0x13   :  { %s315_s23 = smov [#allocation5]   ;;  %s262_s27 = scalar_lea.hbm %s469_s1, 64 }
  0x14   :  { %s27_s24 = sshll.u32 %s315_s23, 4  ;;  %p263_p8 = scmp.ne.s32.totalorder %s469_s1, %s262_s27  ;;  %s28_s24 = int_to_ptr.vmem [resolvable:$true] %s27_s24 }
  0x15   :  { %p266_p9 = scmp.lt.u32.totalorder %s262_s27, %s469_s1 }
  0x17   :  { %p268_p10 = pnand %p266_p9, %p263_p8 }
  0x19   :  { %271 = shalt.err (!%p268_p10)
}
  0x1a   :  { %s272_s4 = scalar_lea.vmem %s28_s24, 64  ;;  %p277_p12 = scmp.lt.s32.totalorder %s28_s24, %s28_s24 }
  0x1b   :  { %p273_p11 = scmp.ne.s32.totalorder %s28_s24, %s272_s4  ;;  %p278_p13 = scmp.lt.s32.totalorder %s272_s4, %s272_s4 }
  0x1d   :  { %p279_p0 = por %p278_p13, %p277_p12 }
  0x1f   :  { %p280_p1 = pnand %p279_p0, %p273_p11 }
  0x21   :  { %283 = shalt.err (!%p280_p1)
}
  0x22   :  { %33 = dma.hbm_to_vmem [thread:$0]  %s469_s1, 64, %s28_s24, [#allocation6], %s313_s19, %s313_s19, %s314_s20  }
  0x23   :  { %306 = dma.done.wait [#allocation3], 256  }
  0x24   :  { %307 = vsyncadd [#allocation3], 4294967040 }
  0x25   :  { %308 = dma.done.wait [#allocation6], 64  }
  0x26   :  { %309 = vsyncadd [#allocation6], 4294967232  ;;  %vm56_vm0 = vcmask 1041408   ;;  %v357_v0 = vld [vmem:[#allocation2] sm:$0x3]  ;;  %vm44_vm10 = vcmask 0  }
  0x27   :  { %v359_v1 = vld [vmem:[#allocation2 + $0x2] sm:$0x3]  ;;  %v361_v2 = vld [vmem:[#allocation2 + $0x4] sm:$0x3]  ;;  %v363_v3 = vld [vmem:[#allocation2 + $0x6] sm:$0x3] }
  0x28   :  { %v365_v4 = vld [vmem:[#allocation2 + $0x8] sm:$0x3]  ;;  %v367_v5 = vld [vmem:[#allocation2 + $0xa] sm:$0x3]  ;;  %v369_v6 = vld [vmem:[#allocation2 + $0xc] sm:$0x3] }
  0x29   :  { %v371_v7 = vld [vmem:[#allocation2 + $0xe] sm:$0x3]  ;;  %v57_v8 = vsel %vm56_vm0, %v357_v0, -inf  ;;  %v58_v9 = vsel %vm56_vm0, %v359_v1, -inf  ;;  %v59_v10 = vsel %vm56_vm0, %v361_v2, -inf  ;;  %v61_v11 = vsel %vm56_vm0, %v363_v3, -inf }
  0x2a   :  { %v60_v12 = vmax.f32 %v57_v8, %v59_v10  ;;  %v62_v13 = vmax.f32 %v58_v9, %v61_v11  ;;  %v64_v14 = vsel %vm56_vm0, %v365_v4, -inf  ;;  %v65_v15 = vsel %vm56_vm0, %v367_v5, -inf  ;;  %v54_v38 = vld [vmem:[#allocation5] sm:$0x3]  ;;  %v55_v40 = vld [vmem:[#allocation5 + $0x2] sm:$0x3] }
  0x2b   :  { %v66_v16 = vsel %vm56_vm0, %v369_v6, -inf  ;;  %v68_v17 = vsel %vm56_vm0, %v371_v7, -inf  ;;  %vm129_vm1 = vcmp.eq.s32.totalorder %v54_v38, 0  ;;  %vm130_vm2 = vcmp.eq.s32.totalorder %v54_v38, 1  ;;  %s317_s1 = smov [#allocation7]  }
  0x2c   :  { %v389_v18 = vmax.f32 %v60_v12, %v62_v13  ;;  %v67_v19 = vmax.f32 %v64_v14, %v66_v16  ;;  %v69_v20 = vmax.f32 %v65_v15, %v68_v17  ;;  %vm131_vm3 = vcmp.eq.s32.totalorder %v54_v38, 2  ;;  %s202_s6 = sshll.u32 %s317_s1, 4  ;;  %s203_s6 = int_to_ptr.vmem [resolvable:$true] %s202_s6 }
  0x2d   :  { %v137_v45 = vsel %vm129_vm1, %v357_v0, 0.0  ;;  %v138_v46 = vsel %vm130_vm2, %v359_v1, 0.0  ;;  %vm133_vm4 = vcmp.eq.s32.totalorder %v55_v40, 0  ;;  %vm134_vm5 = vcmp.eq.s32.totalorder %v55_v40, 1  ;;  %s284_s8 = scalar_lea.vmem %s203_s6, 16  ;;  %s288_s9 = scalar_lea.vmem %s203_s6, 32 }
  0x2e   :  { %v391_v21 = vmax.f32 %v67_v19, %v69_v20  ;;  %v71_v22 = vsub.f32 %v357_v0, %v389_v18  ;;  %v72_v23 = vsub.f32 %v359_v1, %v389_v18  ;;  %v73_v24 = vsub.f32 %v361_v2, %v389_v18  ;;  %p285_p2 = scmp.ne.s32.totalorder %s203_s6, %s284_s8  ;;  %p289_p3 = scmp.lt.s32.totalorder %s203_s6, %s203_s6 }
  0x2f   :  { %v74_v25 = vsub.f32 %v363_v3, %v389_v18  ;;  %v115_v52 = vsel %vm56_vm0, %v357_v0, 0.0  ;;  %v116_v53 = vsel %vm56_vm0, %v359_v1, 0.0  ;;  %v139_v54 = vsel %vm131_vm3, %v361_v2, 0.0  ;;  %p290_p4 = scmp.lt.s32.totalorder %s288_s9, %s284_s8 }
  0x30   :  { %v75_v26 = vsub.f32 %v365_v4, %v391_v21  ;;  %v76_v27 = vsub.f32 %v367_v5, %v391_v21  ;;  %v77_v28 = vsub.f32 %v369_v6, %v391_v21  ;;  %v79_v29 = vmul.f32 1.442695, %v71_v22 }
  0x31   :  { %v81_v30 = vmul.f32 1.442695, %v72_v23  ;;  %v83_v31 = vmul.f32 1.442695, %v73_v24  ;;  %v78_v32 = vsub.f32 %v371_v7, %v391_v21  ;;  %v85_v33 = vmul.f32 1.442695, %v74_v25  ;;  %p291_p5 = por %p290_p4, %p289_p3 }
  0x32   :  { %220 = vpow2.f32 %v79_v29  ;;  %v87_v34 = vmul.f32 1.442695, %v75_v26  ;;  %v89_v35 = vmul.f32 1.442695, %v76_v27  ;;  %v91_v36 = vmul.f32 1.442695, %v77_v28 }
  0x33   :  { %222 = vpow2.f32 %v81_v30  ;;  %v93_v37 = vmul.f32 1.442695, %v78_v32  ;;  %v145_v58 = vsel %vm56_vm0, %v137_v45, 0.0  ;;  %v146_v59 = vsel %vm56_vm0, %v138_v46, 0.0  ;;  %p292_p6 = pnand %p291_p5, %p285_p2 }
  0x34   :  { %224 = vpow2.f32 %v83_v31  ;;  %vm132_vm6 = vcmp.eq.s32.totalorder %v54_v38, 3  ;;  %v141_v62 = vsel %vm133_vm4, %v365_v4, 0.0  ;;  %v142_v63 = vsel %vm134_vm5, %v367_v5, 0.0 }
  0x35   :  { %226 = vpow2.f32 %v85_v33  ;;  %vm135_vm7 = vcmp.eq.s32.totalorder %v55_v40, 2  ;;  %v147_v11 = vadd.f32 %v146_v59, %v145_v58  ;;  %v148_v12 = vsel %vm56_vm0, %v139_v54, 0.0 }
  0x36   :  { %228 = vpow2.f32 %v87_v34  ;;  %v167_v13 = vlaneseq  ;;  %v152_v15 = vsel %vm56_vm0, %v141_v62, 0.0  ;;  %v153_v16 = vsel %vm56_vm0, %v142_v63, 0.0 }
  0x37   :  { %230 = vpow2.f32 %v89_v35  ;;  %v117_v17 = vadd.f32 %v116_v53, %v115_v52  ;;  %v118_v19 = vsel %vm56_vm0, %v361_v2, 0.0  ;;  %v140_v20 = vsel %vm132_vm6, %v363_v3, 0.0 }
  0x38   :  { %232 = vpow2.f32 %v91_v36  ;;  %v143_v22 = vsel %vm135_vm7, %v369_v6, 0.0  ;;  %v122_v24 = vsel %vm56_vm0, %v365_v4, 0.0  ;;  %v123_v25 = vsel %vm56_vm0, %v367_v5, 0.0 }
  0x39   :  { %234 = vpow2.f32 %v93_v37  ;;  %vm136_vm8 = vcmp.eq.s32.totalorder %v55_v40, 3  ;;  %v149_v26 = vadd.f32 %v148_v12, %v147_v11  ;;  %v154_v27 = vadd.f32 %v153_v16, %v152_v15 }
  0x3a   :  { %v150_v28 = vsel %vm56_vm0, %v140_v20, 0.0  ;;  %v155_v2 = vsel %vm56_vm0, %v143_v22, 0.0  ;;  %v168_v29 = vshrl.u32 %v167_v13, 7  ;;  %v119_v30 = vadd.f32 %v118_v19, %v117_v17 }
  0x3b   :  { %v124_v31 = vadd.f32 %v123_v25, %v122_v24  ;;  %v144_v32 = vsel %vm136_vm8, %v371_v7, 0.0  ;;  %v120_v33 = vsel %vm56_vm0, %v363_v3, 0.0  ;;  %v125_v4 = vsel %vm56_vm0, %v369_v6, 0.0 }
  0x3c   :  { %v221_v39 = vpop.eup %220  ;;  %v151_v5 = vadd.f32 %v150_v28, %v149_v26  ;;  %v156_v34 = vadd.f32 %v155_v2, %v154_v27  ;;  %v157_v35 = vsel %vm56_vm0, %v144_v32, 0.0  ;;  %v170_v36 = vand.u32 127, %v167_v13 }
  0x3d   :  { %v223_v41 = vpop.eup %222  ;;  %v95_v42 = vsel %vm56_vm0, %v221_v39, 0.0  ;;  %v174_v37 = vmul.u32 128, %v168_v29  ;;  %v121_v38 = vadd.f32 %v120_v33, %v119_v30  ;;  %v126_v39 = vadd.f32 %v125_v4, %v124_v31 }
  0x3e   :  { %v225_v43 = vpop.eup %224  ;;  %v96_v44 = vsel %vm56_vm0, %v223_v41, 0.0  ;;  %v127_v41 = vsel %vm56_vm0, %v371_v7, 0.0  ;;  %v316_v59 = vmov 0.0  }
  0x3f   :  { %v227_v47 = vpop.eup %226  ;;  %v97_v48 = vadd.f32 %v96_v44, %v95_v42  ;;  %v98_v49 = vsel %vm56_vm0, %v225_v43, 0.0  ;;  %v158_v43 = vadd.f32 %v157_v35, %v156_v34  ;;  %v159_v44 = vmul.f32 0.95, %v151_v5  ;;  %45 = vst.msk [vmem:[#allocation7] sm:$0x1] %vm44_vm10, %v316_v59 }
  0x40   :  { %v229_v50 = vpop.eup %228  ;;  %v100_v51 = vsel %vm56_vm0, %v227_v47, 0.0  ;;  %v175_v45 = vadd.s32 %v174_v37, %v170_v36  ;;  %v128_v46 = vadd.f32 %v127_v41, %v126_v39  ;;  %v163_v6 = vmul.f32 0.0125, %v121_v38 }
  0x41   :  { %v231_v55 = vpop.eup %230  ;;  %v99_v56 = vadd.f32 %v98_v49, %v97_v48  ;;  %v102_v57 = vsel %vm56_vm0, %v229_v50, 0.0  ;;  %v160_v49 = vmul.f32 0.95, %v158_v43 }
  0x42   :  { %v233_v60 = vpop.eup %232  ;;  %v103_v61 = vsel %vm56_vm0, %v231_v55, 0.0  ;;  %vm176_vm9 = vcmp.lt.s32.totalorder %v175_v45, 256  ;;  %v164_v52 = vmul.f32 0.0125, %v128_v46 }
  0x43   :  { %v235_v0 = vpop.eup %234  ;;  %v101_v1 = vadd.f32 %v100_v51, %v99_v56  ;;  %v104_v8 = vadd.f32 %v103_v61, %v102_v57  ;;  %v105_v9 = vsel %vm56_vm0, %v233_v60, 0.0 }
  0x44   :  { %v107_v10 = vsel %vm56_vm0, %v235_v0, 0.0 }
  0x45   :  { %v106_v14 = vadd.f32 %v105_v9, %v104_v8  ;;  %236 = vlog2.f32 %v101_v1 }
  0x46   :  { %v179_v8 = vld [vmem:[#allocation7] sm:$0x1] }
  0x47   :  { %v108_v23 = vadd.f32 %v107_v10, %v106_v14 }
  0x49   :  { %238 = vlog2.f32 %v108_v23 }
  0x4f   :  { %v237_v40 = vpop.eup %236 }
  0x50   :  { %v110_v42 = vmul.f32 0.6931472, %v237_v40 }
  0x52   :  { %v113_v3 = vadd.f32 %v110_v42, %v389_v18 }
  0x53   :  { %v239_v47 = vpop.eup %238 }
  0x54   :  { %v112_v48 = vmul.f32 0.6931472, %v239_v47  ;;  %v161_v50 = vsub.f32 %v113_v3, %v159_v44 }
  0x56   :  { %v114_v51 = vadd.f32 %v112_v48, %v391_v21  ;;  %v165_v53 = vsub.f32 %v161_v50, %v163_v6 }
  0x58   :  { %v162_v54 = vsub.f32 %v114_v51, %v160_v49  ;;  %v177_v55 = vsel %vm176_vm9, %v165_v53, 0.0 }
  0x59   :  { %v180_v56 = vsel %vm56_vm0, %v177_v55, 0.0 }
  0x5a   :  { %v166_v7 = vsub.f32 %v162_v54, %v164_v52 }
  0x5c   :  { %v178_v57 = vsel %vm176_vm9, %v166_v7, 0.0 }
  0x5d   :  { %v181_v58 = vsel %vm56_vm0, %v178_v57, 0.0 }
  0x5e   :  { %v182_v18 = vadd.f32 %v181_v58, %v180_v56 }
  0x60   :  { %183 = vadd.xlane.f32.xlu0 %v182_v18 }
  0xed   :  { %v184_v60 = vpop.xlane.xlu0 %183 }
  0xee   :  { %v185_v61 = vrot.slane %v184_v60, 4 }
  0xf0   :  { %v186_v62 = vadd.f32 %v185_v61, %v184_v60 }
  0xf2   :  { %v187_v21 = vrot.slane %v186_v62, 2 }
  0xf4   :  { %v188_v63 = vadd.f32 %v187_v21, %v186_v62 }
  0xf6   :  { %v189_v0 = vrot.slane %v188_v63, 1 }
  0xf8   :  { %v190_v1 = vadd.f32 %v189_v0, %v188_v63 }
  0xfa   :  { %212 = vpush %v190_v1 }
 0x12b   :  { %s213_s7 = spop %212 }
 0x12c   :  { %v192_v9 = vstv %s213_s7 }
 0x12d   :  { %v193_v10 = vadd.f32 %v192_v9, %v179_v8 }
 0x12f   :  { %195 = vst.msk [vmem:[#allocation7] sm:$0x1] %vm44_vm10, %v193_v10 }
 0x130   :  { %295 = shalt.err (!%p292_p6)
}
 0x131   :  { %s296_s12 = scalar_lea.hbm %s470_s2, 16 }
 0x132   :  { %p297_p7 = scmp.ne.s32.totalorder %s470_s2, %s296_s12  ;;  %p300_p8 = scmp.lt.u32.totalorder %s296_s12, %s470_s2 }
 0x134   :  { %p302_p9 = pnand %p300_p8, %p297_p7 }
 0x136   :  { %305 = shalt.err (!%p302_p9)
}
 0x137   :  { %205 = dma.vmem_to_hbm [thread:$0]  %s203_s6, 16, %s470_s2, [#allocation4]  }
 0x138   :  { %310 = dma.done.wait [#allocation4], 16  }
 0x139   :  { %311 = vsyncadd [#allocation4], 4294967280 }
 0x13a   :  { %209 = vsyncpa [#allocation3], 1 }
 0x13b   :  { %210 = vsyncpa [#allocation6], 1 }
 0x13c   :  { %211 = vsyncpa [#allocation4], 1 }

</bundles_post_ra>
